<compile_context>
chip_gen: v7x
topology: tpu7x:2x2x1
jax: 0.10.0
libtpu: 0.0.40
codegen_flags: <defaults>
</compile_context>

<pallas_src>
import jax
import jax.numpy as jnp
from jax.experimental import pallas as pl
from jax.experimental.pallas import tpu as pltpu

# Module hyper-parameters (synthetic, small).
NUM_HIDDEN_NODES = 32          # H
NUM_CLASSES = 127              # output dim V = NUM_CLASSES + 1 = 128


# ---------------------------------------------------------------------------
# Kernel
# ---------------------------------------------------------------------------
def _joint_kernel(enc_ref, pred_ref, we_ref, wp_ref, bias_ref, out_ref):
    # enc_ref:  (1, tT, H)   current batch element's encoder tile
    # pred_ref: (1, U,  H)   current batch element's prediction-net outputs
    # we_ref:   (H, V)       first half of Linear weight (enc features)
    # wp_ref:   (H, V)       second half of Linear weight (pred features)
    # bias_ref: (1, V)
    # out_ref:  (1, tT, U, V)
    enc = enc_ref[0]                                     # (tT, H)
    pred = pred_ref[0]                                   # (U, H)

    a = jnp.dot(enc, we_ref[...],
                preferred_element_type=jnp.float32)      # (tT, V)
    p = jnp.dot(pred, wp_ref[...],
                preferred_element_type=jnp.float32)      # (U, V)
    p = p + bias_ref[...]                                # fold bias once

    # Broadcast-add reproduces expand+concat+linear semantics.  f32 accumulate;
    # the narrowing cast is fused into the store so bf16/fp8 output halves /
    # quarters HBM writeback for free.  The sublane broadcast of `a` across U
    # is XLU/VALU filler far under the vst/DMA roofline.
    out_ref[0] = (a[:, None, :] + p[None, :, :]).astype(out_ref.dtype)


# ---------------------------------------------------------------------------
# Tiling heuristics (generation-aware)
# ---------------------------------------------------------------------------
def _target_slab_bytes():
    """Output-slab target: ~4 MiB on v5e/v6e (128 MiB VMEM), ~2 MiB on v7x."""
    try:
        info = pltpu.get_tpu_info()
        vmem = getattr(info, "vmem_capacity_bytes", None)
    except Exception:  # not on TPU / interpret mode / API unavailable
        vmem = None
    if vmem is not None and vmem >= 96 * 1024 * 1024:
        return 4 * 1024 * 1024          # v5e / v6e: plenty of physical VMEM
    return 2 * 1024 * 1024              # v7x (64 MiB) or unknown: stay modest


def _pick_tile_t(T, U, V, out_itemsize, B, target_bytes, min_grid_steps=4):
    """Pick a T tile size.

    Constraints / goals:
      * (tT, U, V) output slab ~<= target_bytes (pipeline-friendly, VMEM-safe).
      * tT is a multiple of 8 (block rule for the enc (tT, H) tile) and
        preferably a divisor of T (no partial last tile).
      * B * ceil(T/tT) >= min_grid_steps so v7x megacore has work on both TCs.
    """
    row_bytes = max(1, U * V * out_itemsize)
    cap_rows = max(8, target_bytes // row_bytes)

    cands = [d for d in range(8, T + 1, 8) if T % d == 0]
    if not cands:
        # T < 8 or no 8-aligned divisor: use whole-T block (equal-to-full-dim
        # satisfies the block rule); typical only for toy / ragged T.
        return T

    fitting = [d for d in cands if d <= cap_rows]
    tT = max(fitting) if fitting else min(cands)

    # Ensure enough independent grid steps for megacore sharding (v7x: 2 TCs).
    while B * pl.cdiv(T, tT) < min_grid_steps:
        smaller = [d for d in cands if d < tT]
        if not smaller:
            break
        tT = max(smaller)
    return tT


# ---------------------------------------------------------------------------
# Wrapper
# ---------------------------------------------------------------------------
def joint_forward(enc_output, pred_output, weight, bias, out_dtype=None):
    """RNN-T joint network forward.

    Args:
      enc_output:  (B, T, H)  padded encoder outputs (batch-first).
      pred_output: (B, U, H)  prediction-network outputs.
      weight:      (V, 2H)    PyTorch nn.Linear weight layout.
      bias:        (V,)
      out_dtype:   output dtype.  None => enc_output.dtype (exact PyTorch
                   semantics).  RECOMMENDED: jnp.bfloat16 — the kernel is
                   HBM-store-bound and accumulates in f32 with cast-at-store,
                   so bf16 output is a near-exact 2x wall-clock win.  On v7x,
                   jnp.float8_e4m3fn is accepted for a further ~2x if the
                   downstream loss tolerates fp8 logits.

    Returns: (B, T, U, V)
    """
    B, T, H = enc_output.shape
    B2, U, H2 = pred_output.shape
    assert B == B2 and H == H2
    V = bias.shape[0]
    out_dtype = enc_output.dtype if out_dtype is None else jnp.dtype(out_dtype)
    out_itemsize = jnp.dtype(out_dtype).itemsize
    in_itemsize = enc_output.dtype.itemsize

    # Pad U to a multiple of 8 so every (U, V) output slab stores full vregs
    # (no masked vst on the sublane axis).  Padded rows are sliced off below.
    U_pad = ((U + 7) // 8) * 8
    if U_pad != U:
        pred_output = jnp.pad(pred_output, ((0, 0), (0, U_pad - U), (0, 0)))

    # Split and transpose the nn.Linear weight: y = x @ W.T + b.
    w_t = weight.T                      # (2H, V)
    w_enc = w_t[:H]                     # (H, V)
    w_pred = w_t[H:]                    # (H, V)
    bias2d = bias.reshape(1, V)

    target_bytes = _target_slab_bytes()
    tT = _pick_tile_t(T, U_pad, V, out_itemsize, B, target_bytes)
    n_t = pl.cdiv(T, tT)

    grid_spec = pltpu.PrefetchScalarGridSpec(
        num_scalar_prefetch=0,
        grid=(B, n_t),
        in_specs=[
            pl.BlockSpec((1, tT, H), lambda b, t: (b, t, 0)),    # enc (T-tiled)
            pl.BlockSpec((1, U_pad, H), lambda b, t: (b, 0, 0)), # pred (per b)
            pl.BlockSpec((H, V), lambda b, t: (0, 0)),           # w_enc (resident)
            pl.BlockSpec((H, V), lambda b, t: (0, 0)),           # w_pred (resident)
            pl.BlockSpec((1, V), lambda b, t: (0, 0)),           # bias (resident)
        ],
        out_specs=pl.BlockSpec((1, tT, U_pad, V), lambda b, t: (b, t, 0, 0)),
    )

    # Explicit VMEM budget: double-buffered output slab + enc tile + resident
    # operands + headroom; keeps large tiles legal even under the 16 MiB (v5e)
    # / 32 MiB (v6e, v7x) scoped defaults, while staying under v7x's 64 MiB.
    out_tile_bytes = tT * U_pad * V * out_itemsize
    enc_tile_bytes = tT * H * in_itemsize
    resident_bytes = (U_pad * H + 2 * H * V + V) * in_itemsize
    vmem_need = 2 * (out_tile_bytes + enc_tile_bytes + resident_bytes) + (4 << 20)
    vmem_limit = int(min(max(vmem_need, 16 << 20), 48 << 20))

    # Honest (bandwidth-dominated) cost for the XLA scheduler, including the
    # per-T-tile recompute of the pred-side matmul.
    in_bytes = (B * T * H + B * U_pad * H + 2 * H * V + V) * in_itemsize
    out_bytes = B * T * U_pad * V * out_itemsize
    flops = (2 * B * T * H * V            # enc @ w_enc (each T row once)
             + 2 * B * n_t * U_pad * H * V  # pred @ w_pred, recomputed per tile
             + B * T * U_pad * V)         # broadcast add
    cost = pl.CostEstimate(
        flops=int(flops),
        transcendentals=0,
        bytes_accessed=int(in_bytes + out_bytes),
    )

    out = pl.pallas_call(
        _joint_kernel,
        out_shape=jax.ShapeDtypeStruct((B, T, U_pad, V), out_dtype),
        grid_spec=grid_spec,
        compiler_params=pltpu.CompilerParams(
            dimension_semantics=("parallel", "parallel"),
            vmem_limit_bytes=vmem_limit,
        ),
        cost_estimate=cost,
    )(enc_output, pred_output, w_enc, w_pred, bias2d)

    if U_pad != U:
        out = out[:, :, :U, :]
    return out


# ---------------------------------------------------------------------------
# Pure-JAX reference (mirrors the PyTorch forward exactly)
# ---------------------------------------------------------------------------
def joint_reference(enc_output, pred_output, weight, bias):
    B, T, H = enc_output.shape
    _, U, _ = pred_output.shape
    enc = jnp.broadcast_to(enc_output[:, :, None, :], (B, T, U, H))
    pred = jnp.broadcast_to(pred_output[:, None, :, :], (B, T, U, H))
    cat = jnp.concatenate([enc, pred], axis=-1)          # (B, T, U, 2H)
    return cat @ weight.T + bias


if __name__ == "__main__":
    B, T, U, H = 2, 16, 8, NUM_HIDDEN_NODES
    V = NUM_CLASSES + 1

    key = jax.random.PRNGKey(0)
    k_enc, k_pred, k_w, k_b = jax.random.split(key, 4)

    enc_output = jax.random.normal(k_enc, (B, T, H), dtype=jnp.float32)
    pred_output = jax.random.normal(k_pred, (B, U, H), dtype=jnp.float32)

    # nn.Linear(2H, V) default init: U(-1/sqrt(fan_in), 1/sqrt(fan_in))
    bound = 1.0 / jnp.sqrt(jnp.float32(2 * H))
    weight = jax.random.uniform(k_w, (V, 2 * H), minval=-bound, maxval=bound,
                                dtype=jnp.float32)
    bias = jax.random.uniform(k_b, (V,), minval=-bound, maxval=bound,
                              dtype=jnp.float32)

    ref = joint_reference(enc_output, pred_output, weight, bias)

    # 1) Exact-semantics path (f32 output, matches the PyTorch module).
    out = joint_forward(enc_output, pred_output, weight, bias)
    out = jax.block_until_ready(out)
    assert out.shape == (B, T, U, V), out.shape
    assert jnp.allclose(out, ref, atol=1e-5, rtol=1e-5), (
        float(jnp.max(jnp.abs(out - ref))))

    # 2) Recommended bandwidth-optimized path: bf16 output (f32 accumulate,
    #    cast at store) — halves the dominant HBM writeback traffic.
    out_bf16 = joint_forward(enc_output, pred_output, weight, bias,
                             out_dtype=jnp.bfloat16)
    out_bf16 = jax.block_until_ready(out_bf16)
    assert out_bf16.dtype == jnp.bfloat16
    assert jnp.allclose(out_bf16.astype(jnp.float32), ref, atol=5e-2, rtol=5e-2)

    # 3) Non-8-aligned U exercises the wrapper-side U padding (full-vreg
    #    stores inside the kernel; padded rows sliced off here).
    U_odd = 6
    pred_odd = pred_output[:, :U_odd, :]
    ref_odd = joint_reference(enc_output, pred_odd, weight, bias)
    out_odd = joint_forward(enc_output, pred_odd, weight, bias)
    out_odd = jax.block_until_ready(out_odd)
    assert out_odd.shape == (B, T, U_odd, V), out_odd.shape
    assert jnp.allclose(out_odd, ref_odd, atol=1e-5, rtol=1e-5), (
        float(jnp.max(jnp.abs(out_odd - ref_odd))))

    print("KERNEL_OK")
</pallas_src>

<mosaic_0001>
module attributes {stable_mosaic.version = 11 : i64} {
  func.func @_joint_kernel(%arg0: i32, %arg1: i32, %arg2: memref<1x8x32xf32, #tpu.memory_space<vmem>>, %arg3: memref<1x8x32xf32, #tpu.memory_space<vmem>>, %arg4: memref<32x128xf32, #tpu.memory_space<vmem>>, %arg5: memref<32x128xf32, #tpu.memory_space<vmem>>, %arg6: memref<1x128xf32, #tpu.memory_space<vmem>>, %arg7: memref<1x8x8x128xf32, #tpu.memory_space<vmem>>) attributes {dimension_semantics = [#tpu.dimension_semantics<parallel>, #tpu.dimension_semantics<parallel>], iteration_bounds = array<i64: 2, 2>, scalar_prefetch = 0 : i64, scratch_operands = 0 : i64, tpu.core_type = #tpu.core_type<tc>, window_params = [{transform_indices = @transform_0, window_bounds = array<i64: 1, 8, 32>}, {transform_indices = @transform_1, window_bounds = array<i64: 1, 8, 32>}, {pipeline_mode = #tpu.pipeline_mode<synchronous>, transform_indices = @transform_2, window_bounds = array<i64: 32, 128>}, {pipeline_mode = #tpu.pipeline_mode<synchronous>, transform_indices = @transform_3, window_bounds = array<i64: 32, 128>}, {pipeline_mode = #tpu.pipeline_mode<synchronous>, transform_indices = @transform_4, window_bounds = array<i64: 1, 128>}, {transform_indices = @transform_5, window_bounds = array<i64: 1, 8, 8, 128>}]} {
    %c0 = arith.constant 0 : index
    %c0_0 = arith.constant 0 : index
    %c0_1 = arith.constant 0 : index
    %0 = vector.load %arg2[%c0, %c0_0, %c0_1] : memref<1x8x32xf32, #tpu.memory_space<vmem>>, vector<1x8x32xf32>
    %1 = vector.shape_cast %0 : vector<1x8x32xf32> to vector<8x32xf32>
    %c0_2 = arith.constant 0 : index
    %c0_3 = arith.constant 0 : index
    %c0_4 = arith.constant 0 : index
    %2 = vector.load %arg3[%c0_2, %c0_3, %c0_4] : memref<1x8x32xf32, #tpu.memory_space<vmem>>, vector<1x8x32xf32>
    %3 = vector.shape_cast %2 : vector<1x8x32xf32> to vector<8x32xf32>
    %c0_5 = arith.constant 0 : index
    %c0_6 = arith.constant 0 : index
    %4 = vector.load %arg4[%c0_5, %c0_6] : memref<32x128xf32, #tpu.memory_space<vmem>>, vector<32x128xf32>
    %cst = arith.constant dense<0.000000e+00> : vector<8x128xf32>
    %5 = tpu.matmul %1, %4, %cst {dimension_numbers = #tpu.dot_dimension_numbers<[1], [0], [0], [1], [0, 0, 1, 1], [], []>} : vector<8x32xf32>, vector<32x128xf32>, vector<8x128xf32> -> vector<8x128xf32>
    %c0_7 = arith.constant 0 : index
    %c0_8 = arith.constant 0 : index
    %6 = vector.load %arg5[%c0_7, %c0_8] : memref<32x128xf32, #tpu.memory_space<vmem>>, vector<32x128xf32>
    %cst_9 = arith.constant dense<0.000000e+00> : vector<8x128xf32>
    %7 = tpu.matmul %3, %6, %cst_9 {dimension_numbers = #tpu.dot_dimension_numbers<[1], [0], [0], [1], [0, 0, 1, 1], [], []>} : vector<8x32xf32>, vector<32x128xf32>, vector<8x128xf32> -> vector<8x128xf32>
    %c0_10 = arith.constant 0 : index
    %c0_11 = arith.constant 0 : index
    %8 = vector.load %arg6[%c0_10, %c0_11] : memref<1x128xf32, #tpu.memory_space<vmem>>, vector<1x128xf32>
    %9 = vector.broadcast %8 : vector<1x128xf32> to vector<8x128xf32>
    %10 = arith.addf %7, %9 : vector<8x128xf32>
    %11 = vector.shape_cast %5 : vector<8x128xf32> to vector<8x1x128xf32>
    %12 = vector.shape_cast %10 : vector<8x128xf32> to vector<1x8x128xf32>
    %13 = vector.broadcast %11 : vector<8x1x128xf32> to vector<8x8x128xf32>
    %14 = vector.broadcast %12 : vector<1x8x128xf32> to vector<8x8x128xf32>
    %15 = arith.addf %13, %14 : vector<8x8x128xf32>
    %c0_12 = arith.constant 0 : index
    %c0_13 = arith.constant 0 : index
    %c0_14 = arith.constant 0 : index
    %c0_15 = arith.constant 0 : index
    %16 = vector.load %arg7[%c0_12, %c0_13, %c0_14, %c0_15] : memref<1x8x8x128xf32, #tpu.memory_space<vmem>>, vector<1x8x8x128xf32>
    %17 = vector.shape_cast %16 : vector<1x8x8x128xf32> to vector<8x8x128xf32>
    %18 = vector.shape_cast %15 : vector<8x8x128xf32> to vector<1x8x8x128xf32>
    tpu.vector_store %arg7[%c0_12, %c0_13, %c0_14, %c0_15], %18 {strides = array<i32>} : memref<1x8x8x128xf32, #tpu.memory_space<vmem>>, vector<1x8x8x128xf32>,
    return
  }
  func.func @transform_0(%arg0: i32, %arg1: i32) -> (i32, i32, i32) {
    %c0_i32 = arith.constant 0 : i32
    %c0_i32_0 = arith.constant 0 : i32
    return %arg0, %arg1, %c0_i32 : i32, i32, i32
  }
  func.func @transform_1(%arg0: i32, %arg1: i32) -> (i32, i32, i32) {
    %c0_i32 = arith.constant 0 : i32
    %c0_i32_0 = arith.constant 0 : i32
    %c0_i32_1 = arith.constant 0 : i32
    return %arg0, %c0_i32, %c0_i32_0 : i32, i32, i32
  }
  func.func @transform_2(%arg0: i32, %arg1: i32) -> (i32, i32) {
    %c0_i32 = arith.constant 0 : i32
    %c0_i32_0 = arith.constant 0 : i32
    %c0_i32_1 = arith.constant 0 : i32
    return %c0_i32, %c0_i32_0 : i32, i32
  }
  func.func @transform_3(%arg0: i32, %arg1: i32) -> (i32, i32) {
    %c0_i32 = arith.constant 0 : i32
    %c0_i32_0 = arith.constant 0 : i32
    %c0_i32_1 = arith.constant 0 : i32
    return %c0_i32, %c0_i32_0 : i32, i32
  }
  func.func @transform_4(%arg0: i32, %arg1: i32) -> (i32, i32) {
    %c0_i32 = arith.constant 0 : i32
    %c0_i32_0 = arith.constant 0 : i32
    %c0_i32_1 = arith.constant 0 : i32
    return %c0_i32, %c0_i32_0 : i32, i32
  }
  func.func @transform_5(%arg0: i32, %arg1: i32) -> (i32, i32, i32, i32) {
    %c0_i32 = arith.constant 0 : i32
    %c0_i32_0 = arith.constant 0 : i32
    %c0_i32_1 = arith.constant 0 : i32
    return %arg0, %arg1, %c0_i32, %c0_i32_0 : i32, i32, i32, i32
  }
}

</mosaic_0001>

<bundles_post_ra>
// kernel: tpu_custom_call.1
= control target key start
LH: loop header
LB: loop body
LE: loop exit
PB: predicated region body
PF: predicated region fallthrough
CT: control target
= control target key end

     0   :  { %s1621_s0 = inlined_call_operand.hbm [shape: f32[2,16,32], index: 0, kind: input, shape index: {}]   ;;  %s1622_s1 = inlined_call_operand.hbm [shape: f32[2,8,32], index: 1, kind: input, shape index: {}]   ;;  %s1623_s2 = inlined_call_operand.hbm [shape: f32[32,128], index: 2, kind: input, shape index: {}]   ;;  %s1624_s3 = inlined_call_operand.hbm [shape: f32[32,128], index: 3, kind: input, shape index: {}]   ;;  %s1625_s4 = inlined_call_operand.vmem [shape: f32[1,128], index: 4, kind: input, shape index: {}]   ;;  %s1626_s5 = inlined_call_operand.hbm [shape: f32[2,16,8,128], index: 5, kind: output, shape index: {}]  }
   0x1   :  { %1637 = sst [smem:[#allocation19_spill]] %s1623_s2 }
   0x2   :  { %1638 = sst [smem:[#allocation20_spill]] %s1624_s3 }
   0x3   :  { %1639 = sst [smem:[#allocation21_spill]] %s1625_s4 }
   0x4   :  { %1640 = sst [smem:[#allocation22_spill]] %s1626_s5 }
   0x5   :  { %10 = vsyncpa [#allocation3], 0 }
   0x6   :  { %12 = vsyncpa [#allocation3 + $0x1], 0 }
   0x7   :  { %13 = vsyncpa [#allocation6], 0 }
   0x8   :  { %15 = vsyncpa [#allocation6 + $0x1], 0 }
   0x9   :  { %16 = vsyncpa [#allocation9], 0 }
   0xa   :  { %17 = vsyncpa [#allocation4], 0 }
   0xb   :  { %19 = vsyncpa [#allocation4 + $0x1], 0  ;;  %s1243_s18 = smov 0   ;;  %s1245_s19 = smov 0  }
   0xc   :  { %s1247_s20 = smov 0   ;;  %s1249_s21 = smov 0  }
   0xd   :  { %s1251_s22 = smov 0   ;;  %s1253_s23 = smov 0  }
   0xe   :  { %s1255_s24 = smov 0   ;;  %s1257_s25 = smov 0  }
   0xf   :  { %s1259_s26 = smov 0   ;;  %s1261_s27 = smov 0  }
  0x10   :  { %s1263_s28 = smov 0  }
  0x11 LB: > { %1641 = sst [smem:[#allocation16_spill]] %s1170_s21  ;;  %s1299_s29 = sadd.s32 4294967295, %s1198_s28   ;;  %s1198_s28 = sphi %s1263_s28, %s25_s28   ;;  %s1194_s27 = sphi %s1261_s27, %s1682_s27   ;;  %s1190_s26 = sphi %s1259_s26, %s1681_s26   ;;  %s1186_s25 = sphi %s1257_s25, %s1680_s25   ;;  %s1182_s24 = sphi %s1255_s24, %s1679_s24   ;;  %s1178_s23 = sphi %s1253_s23, %s1678_s23   ;;  %s1174_s22 = sphi %s1251_s22, %s1677_s22   ;;  %s1170_s21 = sphi %s1249_s21, %s1676_s21   ;;  %s1166_s20 = sphi %s1247_s20, %s1675_s20   ;;  %s1162_s19 = sphi %s1245_s19, %s1674_s19   ;;  %s1158_s18 = sphi %s1243_s18, %s1673_s18  }
  0x12   : > { %p744_p0 = scmp.ge.s32.totalorder %s1198_s28, 1  ;;  %p1627_p1 = scmp.eq.s32.totalorder %s1299_s29, 0 }
  0x13   : > { %p187_p2 = scmp.lt.s32.totalorder %s1198_s28, 5  ;;  %s1200_s6 = smov [#allocation7]  }
  0x14   : > { %s199_s7 = sshll.u32 %s1200_s6, 4  ;;  %s1201_s9 = smov [#allocation8]   ;;  %s200_s7 = int_to_ptr.vmem [resolvable:$true] %s199_s7 }
  0x15   : > { %p1304_p3 = pnand %p744_p0, %p187_p2  ;;  %s212_s10 = sshll.u32 %s1201_s9, 4  ;;  %s1316_s10 = int_to_ptr.vmem [resolvable:$true] %s212_s10 }
  0x16   : > { %s1644_s2 = sld [smem:[#allocation19_spill]] }
  0x17   : > { %s1642_s30 = scalar_select %p1304_p3, 1, 0 }
  0x18   : > { %p826_p4 = pneg %p1304_p3 }
  0x1a   : > { %p1312_p5 = pnand %p826_p4, %p1627_p1 }
  0x1c   : > { %s948_s13 = scalar_lea.hbm %s1644_s2, 512  ;;  %p950_p7 = pneg %p1312_p5 }
  0x1d   : > { %p949_p6 = scmp.ne.s32.totalorder %s1644_s2, %s948_s13  ;;  %p955_p10 = scmp.lt.u32.totalorder %s948_s13, %s1644_s2 }
  0x1f   : > { %p951_p8 = pnand %p950_p7, %p949_p6 }
  0x21   : > { %p952_p9 = pneg %p951_p8 }
  0x23   : > { %p957_p11 = pnand %p955_p10, %p952_p9 }
  0x25   : > { %960 = shalt.err (!%p957_p11)
}
  0x26   : > { %s961_s6 = scalar_lea.vmem %s200_s7, 512  ;;  %p969_p2 = scmp.lt.s32.totalorder %s200_s7, %s200_s7 }
  0x27   : > { %p962_p12 = scmp.ne.s32.totalorder %s200_s7, %s961_s6  ;;  %p970_p4 = scmp.lt.s32.totalorder %s961_s6, %s961_s6 }
  0x29   : > { %p964_p13 = pnand %p962_p12, %p950_p7  ;;  %p971_p1 = por %p970_p4, %p969_p2 }
  0x2b   : > { %p965_p0 = pneg %p964_p13 }
  0x2d   : > { %p972_p3 = pnand %p971_p1, %p965_p0 }
  0x2f   : > { %975 = shalt.err (!%p972_p3)
}
  0x30   : > { %s1202_s9 = smov 128   ;;  %s1203_s11 = smov 8  }
  0x31   : > { %829 = dma.hbm_to_vmem [thread:$0]  (!%p1312_p5), %s1644_s2, 512, %s200_s7, [#allocation6], %s1202_s9, %s1202_s9, %s1203_s11  }
  0x32   : > { %s1645_s3 = sld [smem:[#allocation20_spill]] }
  0x38   : > { %s976_s16 = scalar_lea.hbm %s1645_s3, 512 }
  0x39   : > { %p977_p6 = scmp.ne.s32.totalorder %s1645_s3, %s976_s16  ;;  %p983_p8 = scmp.lt.u32.totalorder %s976_s16, %s1645_s3 }
  0x3b   : > { %p979_p1 = pnand %p977_p6, %p950_p7 }
  0x3d   : > { %p980_p3 = pneg %p979_p1 }
  0x3f   : > { %p985_p9 = pnand %p983_p8, %p980_p3 }
  0x41   : > { %988 = shalt.err (!%p985_p9)
}
  0x42   : > { %s989_s7 = scalar_lea.vmem %s1316_s10, 512  ;;  %p997_p13 = scmp.lt.s32.totalorder %s1316_s10, %s1316_s10 }
  0x43   : > { %p990_p10 = scmp.ne.s32.totalorder %s1316_s10, %s989_s7  ;;  %p998_p0 = scmp.lt.s32.totalorder %s989_s7, %s989_s7 }
  0x45   : > { %p992_p11 = pnand %p990_p10, %p950_p7  ;;  %p999_p2 = por %p998_p0, %p997_p13 }
  0x47   : > { %p993_p12 = pneg %p992_p11 }
  0x49   : > { %p1000_p4 = pnand %p999_p2, %p993_p12 }
  0x4b   : > { %1003 = shalt.err (!%p1000_p4)
}
  0x4c   : > { %832 = dma.hbm_to_vmem [thread:$0]  (!%p1312_p5), %s1645_s3, 512, %s1316_s10, [#allocation9], %s1202_s9, %s1202_s9, %s1203_s11  }
  0x4d   : > { %s743_s8 = sadd.s32 4294967294, %s1198_s28   ;;  %s34_s12 = sadd.s32 1, %s1190_s26 }
  0x4e   : > { %p35_p7 = scmp.ge.s32.totalorder %s34_s12, 2  ;;  %s37_s13 = sadd.s32 1, %s1194_s27 }
  0x4f   : > { %s46_s14 = sadd.s32 1, %s1178_s23  ;;  %p53_p6 = scmp.ne.s32.totalorder %s1178_s23, %s1174_s22 }
  0x50   : > { %s1684_s12 = smov (%p35_p7, %s34_s12), 0  ;;  %s1686_s13 = smov (!%p35_p7, %s37_s13), %s1194_s27 }
  0x51   : > { %1646 = sst [smem:[#allocation17_spill]] %s1684_s12  ;;  %s42_s15 = ssub.s32 %s1190_s26, %s1684_s12 }
  0x52   : > { %p1634_p1 = scmp.eq.s32.totalorder %s1198_s28, 0  ;;  %p39_p3 = scmp.ge.s32.totalorder %s1686_s13, 2 }
  0x53   : > { %p59_p8 = scmp.ne.s32.totalorder %s1174_s22, %s1170_s21  ;;  %p174_p9 = scmp.eq.s32.totalorder %s1299_s29, 3 }
  0x54   : > { %p1381_p5 = por %p1634_p1, %p53_p6  ;;  %s1688_s13 = smov (%p39_p3, %s1686_s13), 0 }
  0x55   : > { %1648 = sst [smem:[#allocation18_spill]] %s1688_s13  ;;  %p1649_p10 = scmp.eq.s32.totalorder %s1299_s29, 0 }
  0x56   : > { %p1394_p12 = por %p174_p9, %p53_p6  ;;  %s1400_s16 = ssub.s32 %s1194_s27, %s1688_s13 }
  0x57   : > { %p1390_p11 = por %p1649_p10, %p59_p8  ;;  %p180_p13 = scmp.eq.s32.totalorder %s743_s8, 3 }
  0x58   : > { %s1651_s11 = scalar_select %p1394_p12, 1, 0 }
  0x59   : > { %s43_s17 = sor.u32 %s42_s15, %s1400_s16  ;;  %p1404_p4 = por %p180_p13, %p59_p8 }
  0x5a   : > { %p44_p2 = scmp.eq.s32.totalorder %s43_s17, 0  ;;  %p1633_p7 = scmp.lt.s32.totalorder %s1198_s28, 4 }
  0x5b   : > { %s1652_s6 = scalar_select %p1404_p4, 1, 0 }
  0x5c   : > { %s229_s7 = sand.u32 1, %s1178_s23   ;;  %s749_s2 = sshll.u32 %s1194_s27, 1 }
  0x5d   : > { %s1411_s4 = scalar_select %p44_p2, %s1178_s23, %s46_s14  }
  0x5e   : > { %s748_s5 = sshll.u32 %s229_s7, 3  ;;  %s238_s3 = sadd.s32 %s1190_s26, %s749_s2 }
  0x5f   : > { %s233_s13 = scalar_lea.vmem [#allocation2], %s748_s5  ;;  %s750_s21 = sshll.u32 %s238_s3, 7 }
  0x60   : > { %s242_s12 = sshll.u32 %s233_s13, 4  ;;  %s1420_s17 = scalar_lea.hbm %s1621_s0, %s750_s21  ;;  %s1415_s12 = int_to_ptr.vmem [resolvable:$true] %s242_s12 }
  0x61   : > { %p1426_p6 = pnand %p1633_p7, %p1381_p5  ;;  %s230_s2 = scalar_lea.sflag [#allocation3], %s229_s7 }
  0x62   : > { %s1004_s3 = scalar_lea.hbm %s1420_s17, 128  ;;  %s1009_s10 = scalar_lea.hbm %s1621_s0, 512 }
  0x63   : > { %p1005_p3 = scmp.ne.s32.totalorder %s1420_s17, %s1004_s3  ;;  %p1006_p8 = pneg %p1426_p6 }
  0x64   : > { %p1010_p5 = scmp.lt.u32.totalorder %s1420_s17, %s1621_s0  ;;  %p1011_p13 = scmp.lt.u32.totalorder %s1009_s10, %s1004_s3 }
  0x65   : > { %p1007_p9 = pnand %p1006_p8, %p1005_p3  ;;  %p1013_p7 = scmp.lt.u32.totalorder %s1004_s3, %s1420_s17 }
  0x66   : > { %p1012_p2 = por %p1011_p13, %p1010_p5 }
  0x67   : > { %p1008_p10 = pneg %p1007_p9 }
  0x68   : > { %p1014_p1 = por %p1013_p7, %p1012_p2 }
  0x6a   : > { %p1015_p0 = pnand %p1014_p1, %p1008_p10 }
  0x6c   : > { %1018 = shalt.err (!%p1015_p0)
}
  0x6d   : > { %s1019_s7 = scalar_lea.vmem %s1415_s12, 128  ;;  %s1204_s15 = smov [#allocation2]  }
  0x6e   : > { %p1020_p3 = scmp.ne.s32.totalorder %s1415_s12, %s1019_s7  ;;  %s1024_s21 = sshll.u32 %s1204_s15, 4  ;;  %s1025_s21 = int_to_ptr.vmem [resolvable:$false] %s1024_s21 }
  0x6f   : > { %s1026_s13 = scalar_lea.vmem %s1025_s21, 256  ;;  %p1027_p12 = scmp.lt.s32.totalorder %s1415_s12, %s1025_s21 }
  0x70   : > { %p1022_p9 = pnand %p1020_p3, %p1006_p8  ;;  %p1028_p5 = scmp.lt.s32.totalorder %s1026_s13, %s1019_s7 }
  0x72   : > { %p1023_p4 = pneg %p1022_p9  ;;  %p1029_p13 = por %p1028_p5, %p1027_p12 }
  0x74   : > { %p1030_p7 = pnand %p1029_p13, %p1023_p4 }
  0x76   : > { %1033 = shalt.err (!%p1030_p7)
}
  0x77   : > { %836 = dma.hbm_to_vmem [thread:$0]  (!%p1426_p6), %s1420_s17, 128, %s1415_s12, %s230_s2  }
  0x78   : > { %s72_s3 = sadd.s32 1, %s1166_s20  ;;  %p1654_p1 = scmp.eq.s32.totalorder %s1400_s16, 0 }
  0x79   : > { %p79_p12 = scmp.ne.s32.totalorder %s1166_s20, %s1162_s19  ;;  %p85_p0 = scmp.ne.s32.totalorder %s1162_s19, %s1158_s18 }
  0x7a   : > { %s1459_s10 = scalar_select %p1654_p1, %s1166_s20, %s72_s3  }
  0x7b   : > { %s249_s14 = sand.u32 1, %s1198_s28   ;;  %s251_s5 = sand.u32 1, %s1166_s20  }
  0x7c   : > { %p1655_p4 = scmp.eq.s32.totalorder %s1198_s28, 0  ;;  %p1656_p10 = scmp.eq.s32.totalorder %s1299_s29, 0 }
  0x7d   : > { %s751_s7 = sshll.u32 %s251_s5, 3  ;;  %s752_s15 = sshll.u32 %s1194_s27, 7 }
  0x7e   : > { %p81_p8 = por %p79_p12, %p1655_p4  ;;  %p1471_p2 = por %p85_p0, %p1656_p10 }
  0x7f   : > { %s1479_s12 = scalar_lea.hbm %s1622_s1, %s752_s15  ;;  %s253_s18 = scalar_lea.vmem [#allocation5], %s751_s7 }
  0x80   : > { %s1657_s8 = scalar_select %p1471_p2, 1, 0 }
  0x81   : > { %s260_s16 = sshll.u32 %s253_s18, 4  ;;  %p1658_p6 = scmp.lt.s32.totalorder %s1198_s28, 4  ;;  %s1481_s16 = int_to_ptr.vmem [resolvable:$true] %s260_s16 }
  0x82   : > { %s250_s2 = scalar_lea.sflag [#allocation6], %s249_s14  ;;  %s1034_s3 = scalar_lea.hbm %s1479_s12, 128 }
  0x83   : > { %p1485_p3 = pnand %p1658_p6, %p81_p8  ;;  %p1035_p9 = scmp.ne.s32.totalorder %s1479_s12, %s1034_s3 }
  0x84   : > { %s1039_s15 = scalar_lea.hbm %s1622_s1, 256  ;;  %p1040_p1 = scmp.lt.u32.totalorder %s1479_s12, %s1622_s1 }
  0x85   : > { %p1036_p5 = pneg %p1485_p3  ;;  %p1041_p12 = scmp.lt.u32.totalorder %s1039_s15, %s1034_s3 }
  0x86   : > { %p1043_p4 = scmp.lt.u32.totalorder %s1034_s3, %s1479_s12 }
  0x87   : > { %p1037_p13 = pnand %p1036_p5, %p1035_p9  ;;  %p1042_p0 = por %p1041_p12, %p1040_p1 }
  0x89   : > { %p1038_p7 = pneg %p1037_p13  ;;  %p1044_p8 = por %p1043_p4, %p1042_p0 }
  0x8b   : > { %p1045_p10 = pnand %p1044_p8, %p1038_p7 }
  0x8d   : > { %1048 = shalt.err (!%p1045_p10)
}
  0x8e   : > { %s1049_s14 = scalar_lea.vmem %s1481_s16, 128  ;;  %s1205_s18 = smov [#allocation5]  }
  0x8f   : > { %p1050_p6 = scmp.ne.s32.totalorder %s1481_s16, %s1049_s14  ;;  %s1054_s5 = sshll.u32 %s1205_s18, 4  ;;  %s1055_s5 = int_to_ptr.vmem [resolvable:$false] %s1054_s5 }
  0x90   : > { %s1056_s7 = scalar_lea.vmem %s1055_s5, 256  ;;  %p1057_p2 = scmp.lt.s32.totalorder %s1481_s16, %s1055_s5 }
  0x91   : > { %p1052_p9 = pnand %p1050_p6, %p1036_p5  ;;  %p1058_p1 = scmp.lt.s32.totalorder %s1056_s7, %s1049_s14 }
  0x93   : > { %p1053_p13 = pneg %p1052_p9  ;;  %p1059_p12 = por %p1058_p1, %p1057_p2 }
  0x95   : > { %p1060_p0 = pnand %p1059_p12, %p1053_p13 }
  0x97   : > { %1063 = shalt.err (!%p1060_p0)
}
  0x98   : > { %839 = dma.hbm_to_vmem [thread:$0]  (!%p1485_p3), %s1479_s12, 128, %s1481_s16, %s250_s2  }
  0x99   : > { %p1660_p7 = scmp.ne.s32.totalorder %s1642_s30, 0 }
  0x9a   : > { %s1517_s3 = sand.u32 (!%p1660_p7), 1, %s1174_s22  }
  0x9b   : > { %269 = sbr.rel (%p1660_p7) target bundleno = 425 (0x1a9), region = 40  ;;  %s754_s15 = sshll.u32 (!%p1660_p7), %s1517_s3, 3 }
  0x9c   : > { %s272_s21 = scalar_lea.sflag (!%p1660_p7), [#allocation3], %s1517_s3  ;;  %s1521_s13 = scalar_lea.vmem (!%p1660_p7), [#allocation2], %s754_s15 }
  0xa2   : > { %1137 = dma.done.wait (%p1390_p11), %s272_s21, 128  }
  0xa3   : > { %1139 = vsyncadd (%p1390_p11), %s272_s21, 4294967168  ;;  %s280_s30 = sand.u32 1, %s1299_s29   ;;  %s282_s12 = sand.u32 1, %s1162_s19  }
  0xa4   : > { %s1529_s16 = sshll.u32 %s282_s12, 3  ;;  %s281_s17 = scalar_lea.sflag [#allocation6], %s280_s30 }
  0xa5   : > { %s284_s2 = scalar_lea.vmem [#allocation5], %s1529_s16  ;;  %p1661_p2 = scmp.ne.s32.totalorder %s1657_s8, 0 }
  0xa7   : > { %1141 = dma.done.wait (%p1661_p2), %s281_s17, 128  }
  0xa8   : > { %1143 = vsyncadd (%p1661_p2), %s281_s17, 4294967168  ;;  %p1662_p3 = scmp.eq.s32.totalorder %s1299_s29, 0 }
  0xaa   : > { %1145 = dma.done.wait (%p1662_p3), [#allocation6], 512   ;;  %p1663_p11 = pmov %p1662_p3 }
  0xab   : > { %p1664_p5 = pmov %p1662_p3 }
  0xac   : > { %1147 = vsyncadd (%p1663_p11), [#allocation6], 4294966784 }
  0xad   : > { %1149 = dma.done.wait (%p1664_p5), [#allocation9], 512   ;;  %p1665_p4 = pmov %p1662_p3 }
  0xae   : > { %v1206_v0 = vmov 0.0|0.0   ;;  %vm1207_vm0 = vmmov 0   ;;  %v1208_v1 = vmov 0.0   ;;  %v327_v2 = vld [vmem:[#allocation7] sm:$0xff]  ;;  %v328_v3 = vld [vmem:[#allocation7 + $0x8] sm:$0xff]  ;;  %v329_v4 = vld [vmem:[#allocation7 + $0x10] sm:$0xff]  ;;  %v494_v18 = vlaneseq }
  0xaf   : > { %1151 = vsyncadd (%p1665_p4), [#allocation9], 4294966784  ;;  %800 = vmatprep.subr.bf16.mxu0 %v1206_v0  ;;  %806 = vmatprep.subr.bf16.mxu1 %v1206_v0  ;;  %v801_v5 = vpack.c.bf16 %v328_v3, %v327_v2  ;;  %v330_v6 = vld [vmem:[#allocation7 + $0x18] sm:$0xff]  ;;  %v405_v7 = vld [vmem:[#allocation8] sm:$0xff]  ;;  %vm331_vm1 = vcmask 261120   ;;  %s1666_s8 = sld [smem:[#allocation21_spill]] }
  0xb0   : > { %786 = vmatprep.mubr.msk.f32.mxu0 %vm1207_vm0, %v1208_v1  ;;  %797 = vmatprep.mubr.msk.f32.mxu1 %vm1207_vm0, %v1208_v1  ;;  %v406_v8 = vld [vmem:[#allocation8 + $0x8] sm:$0xff]  ;;  %v407_v10 = vld [vmem:[#allocation8 + $0x10] sm:$0xff]  ;;  %v408_v11 = vld [vmem:[#allocation8 + $0x18] sm:$0xff]  ;;  %v804_v12 = vpack.c.bf16 %v330_v6, %v329_v4  ;;  %v1209_v16 = vmov 1966171168   ;;  %v495_v20 = vshrl.u32 %v494_v18, 7 }
  0xb1   : > { %v807_v9 = vpack.c.bf16 %v406_v8, %v405_v7  ;;  %802 = vmatpush3.bf16.msra.mxu0 %v801_v5  ;;  %v810_v13 = vpack.c.bf16 %v408_v11, %v407_v10  ;;  %v325_v14 = vld [vmem:[%s1521_s13] sm:$0xff]  ;;  %v326_v15 = vld [vmem:[%s284_s2] sm:$0xff]  ;;  %v492_v17 = vunpack.c.l.s4 %v1209_v16  ;;  %s763_s14 = sshll.u32 %s1182_s24, 3  ;;  %s764_s18 = sshll.u32 %s1186_s25, 4 }
  0xb2   : > { %803 = vmatprep.subr.bf16.mxu0 %v1206_v0  ;;  %v541_v28 = vsub.s32 0, %v495_v20  ;;  %s758_s5 = sshll.u32 %s1517_s3, 6  ;;  %s608_s7 = sadd.s32 %s764_s18, %s763_s14 }
  0xb3   : > { %808 = vmatpush3.bf16.msra.mxu1 %v807_v9  ;;  %v493_v19 = vunpack.c.0.s8 %v492_v17  ;;  %s765_s24 = sshll.u32 %s608_s7, 7  ;;  %s323_s25 = scalar_lea.vmem [#allocation10], %s758_s5 }
  0xb4   : > { %809 = vmatprep.subr.bf16.mxu1 %v1206_v0  ;;  %s611_s15 = sshll.u32 %s323_s25, 4  ;;  %s1667_s30 = sld [smem:[#allocation22_spill]]  ;;  %s1558_s15 = int_to_ptr.vmem [resolvable:$true] %s611_s15 }
  0xb5   : > { %805 = vmatpush3.bf16.msra.mxu0 %v804_v12  ;;  %v496_v21 = vsub.s32 %v493_v19, %v495_v20  ;;  %v760_v26 = vld [vmem:[%s1666_s8] ss:$0 sm:$0xff]  ;;  %s596_s16 = scalar_lea.sflag [#allocation4], %s1517_s3  ;;  %s1064_s17 = scalar_lea.vmem %s1558_s15, 1024 }
  0xb6   : > { %p1065_p8 = scmp.ne.s32.totalorder %s1558_s15, %s1064_s17  ;;  %p1668_p10 = scmp.ne.s32.totalorder %s1651_s11, 0 }
  0xb7   : > { %811 = vmatpush3.bf16.msra.mxu1 %v810_v13  ;;  %s1210_s2 = smov [#allocation10]  }
  0xb8   : > { %787 = vmatmul.mubr.msk.f32.vlgmr.msra.gmra.mrb[0].mxu0 %vm331_vm1, %v325_v14  ;;  %p1066_p6 = pnand %p1065_p8, %p1668_p10  ;;  %s1068_s29 = sshll.u32 %s1210_s2, 4  ;;  %s1069_s29 = int_to_ptr.vmem [resolvable:$false] %s1068_s29 }
  0xb9   : > { %s1070_s9 = scalar_lea.vmem %s1069_s29, 2048  ;;  %p1071_p13 = scmp.lt.s32.totalorder %s1558_s15, %s1069_s29 }
  0xba   : > { %798 = vmatmul.mubr.msk.f32.vlgmr.msra.gmra.mrb[0].mxu1 %vm331_vm1, %v326_v15  ;;  %s1556_s12 = scalar_lea.hbm %s1667_s30, %s765_s24  ;;  %p1067_p9 = pneg %p1066_p6 }
  0xbb   : > { %p1072_p1 = scmp.lt.s32.totalorder %s1070_s9, %s1064_s17 }
  0xbd   : > { %p1073_p12 = por %p1072_p1, %p1071_p13 }
  0xbf   : > { %p1074_p0 = pnand %p1073_p12, %p1067_p9 }
 0x18b   : > { %v401_v22 = vpop.f32.mrb[0].mxu0 }
 0x18c   : > { %v490_v23 = vcombine.high %v401_v22, %v401_v22  ;;  %v497_v24 = vrot.slane %v401_v22, %v496_v21  ;;  %v788_v25 = vpop.f32.mrb[1].mxu0 }
 0x18d   : > { %v485_v27 = vpop.f32.mrb[0].mxu1 }
 0x18e   : > { %v799_v29 = vpop.f32.mrb[1].mxu1  ;;  %v504_v30 = vrot.slane %v490_v23, %v496_v21  ;;  %v505_v31 = vcombine.high %v497_v24, %v497_v24  ;;  %v513_v32 = vrot.slane %v497_v24, %v496_v21  ;;  %v486_v33 = vadd.f32 %v760_v26, %v485_v27 }
 0x190   : > { %v506_v34 = vcombine.high %v504_v30, %v504_v30  ;;  %v520_v35 = vrot.slane %v504_v30, %v496_v21  ;;  %v527_v36 = vrot.slane %v505_v31, %v496_v21  ;;  %v535_v37 = vcombine.high %v513_v32, %v513_v32 }
 0x191   : > { %v542_v38 = vrot.slane %v513_v32, %v541_v28 }
 0x192   : > { %v534_v39 = vrot.slane %v506_v34, %v496_v21  ;;  %v536_v40 = vcombine.high %v520_v35, %v520_v35  ;;  %v537_v41 = vcombine.high %v527_v36, %v527_v36  ;;  %v546_v42 = vrot.slane %v527_v36, %v541_v28 }
 0x193   : > { %v550_v43 = vrot.slane %v535_v37, %v541_v28  ;;  %v558_v44 = vrot.slane %v520_v35, %v541_v28  ;;  %v579_v45 = vadd.f32 %v542_v38, %v486_v33 }
 0x194   : > { %v538_v46 = vcombine.high %v534_v39, %v534_v39  ;;  %v554_v47 = vrot.slane %v537_v41, %v541_v28  ;;  %v562_v48 = vrot.slane %v534_v39, %v541_v28  ;;  %v566_v49 = vrot.slane %v536_v40, %v541_v28 }
 0x195   : > { %v580_v50 = vadd.f32 %v546_v42, %v486_v33  ;;  %v581_v51 = vadd.f32 %v550_v43, %v486_v33  ;;  %v583_v52 = vadd.f32 %v558_v44, %v486_v33  ;;  %587 = vst [vmem:[%s323_s25] sm:$0xff] %v579_v45 }
 0x196   : > { %v570_v53 = vrot.slane %v538_v46, %v541_v28  ;;  %v582_v54 = vadd.f32 %v554_v47, %v486_v33  ;;  %v584_v55 = vadd.f32 %v562_v48, %v486_v33  ;;  %v585_v56 = vadd.f32 %v566_v49, %v486_v33 }
 0x197   : > { %588 = vst [vmem:[%s323_s25 + $0x8] sm:$0xff] %v580_v50  ;;  %589 = vst [vmem:[%s323_s25 + $0x10] sm:$0xff] %v581_v51 }
 0x198   : > { %591 = vst [vmem:[%s323_s25 + $0x20] sm:$0xff] %v583_v52  ;;  %v586_v57 = vadd.f32 %v570_v53, %v486_v33  ;;  %590 = vst [vmem:[%s323_s25 + $0x18] sm:$0xff] %v582_v54 }
 0x199   : > { %592 = vst [vmem:[%s323_s25 + $0x28] sm:$0xff] %v584_v55  ;;  %593 = vst [vmem:[%s323_s25 + $0x30] sm:$0xff] %v585_v56 }
 0x19a   : > { %594 = vst [vmem:[%s323_s25 + $0x38] sm:$0xff] %v586_v57 }
 0x19b   : > { %1077 = shalt.err (!%p1074_p0)
}
 0x19c   : > { %s1078_s8 = scalar_lea.hbm %s1556_s12, 1024  ;;  %s1082_s5 = scalar_lea.hbm %s1667_s30, 4096 }
 0x19d   : > { %p1079_p7 = scmp.ne.s32.totalorder %s1556_s12, %s1078_s8  ;;  %p1083_p11 = scmp.lt.u32.totalorder %s1556_s12, %s1667_s30 }
 0x19e   : > { %p1084_p5 = scmp.lt.u32.totalorder %s1082_s5, %s1078_s8  ;;  %p1086_p8 = scmp.lt.u32.totalorder %s1078_s8, %s1556_s12 }
 0x19f   : > { %p1080_p2 = pnand %p1079_p7, %p1668_p10 }
 0x1a0   : > { %p1085_p4 = por %p1084_p5, %p1083_p11 }
 0x1a1   : > { %p1081_p3 = pneg %p1080_p2 }
 0x1a2   : > { %p1087_p6 = por %p1086_p8, %p1085_p4 }
 0x1a4   : > { %p1088_p9 = pnand %p1087_p6, %p1081_p3 }
 0x1a6   : > { %1091 = shalt.err (!%p1088_p9)
}
 0x1a7   : > { %s1211_s25 = smov 128   ;;  %s1212_s21 = smov 8  }
 0x1a8   : > { %824 = dma.vmem_to_hbm [thread:$0]  (%p1668_p10), %s1558_s15, 1024, %s1556_s12, %s596_s16, %s1211_s25, %s1211_s25, %s1212_s21  }
 0x1a9 PF: > { %s1669_s13 = sld [smem:[#allocation16_spill]]  ;;  %p849_p13 = scmp.ge.s32.totalorder %s1198_s28, 2 }
 0x1aa   : > { %p1670_p1 = scmp.ne.s32.totalorder %s1652_s6, 0 }
 0x1ac   : > { %p841_p12 = pnand %p849_p13, %p1670_p1 }
 0x1af   : > { %s626_s17 = sand.u32 1, %s1669_s13  }
 0x1b0   : > { %s627_s2 = scalar_lea.sflag [#allocation4], %s626_s17 }
 0x1b1   : > { %1153 = dma.done.wait (!%p841_p12), %s627_s2, 1024  }
 0x1b2   : > { %1155 = vsyncadd (!%p841_p12), %s627_s2, 4294966272  ;;  %s25_s28 = sadd.s32 1, %s1198_s28   ;;  %s1671_s11 = sld [smem:[#allocation17_spill]] }
 0x1b3   : > { %p22_p0 = scmp.ge.s32.totalorder %s25_s28, 6   ;;  %s1672_s3 = sld [smem:[#allocation18_spill]] }
 0x1b4   : > { %s1673_s18 = smov %s1162_s19  ;;  %s1674_s19 = smov %s1166_s20 }
 0x1b5   : > { %s1675_s20 = smov %s1459_s10  ;;  %s1676_s21 = smov %s1174_s22 }
 0x1b6   : > { %s1677_s22 = smov %s1178_s23  ;;  %s1678_s23 = smov %s1411_s4 }
 0x1b7   : > { %s1679_s24 = smov %s1190_s26  ;;  %s1680_s25 = smov %s1194_s27 }
 0x1b8   : > { %s1681_s26 = smov %s1671_s11  ;;  %24 = sbr.rel (!%p22_p0) target bundleno = 17 (0x11), region = 106 }
 0x1b9   : > { %s1682_s27 = smov %s1672_s3 }
 0x1bf   :  { %632 = vsyncpa [#allocation3], 1 }
 0x1c0   :  { %634 = vsyncpa [#allocation3 + $0x1], 1 }
 0x1c1   :  { %635 = vsyncpa [#allocation6], 1 }
 0x1c2   :  { %637 = vsyncpa [#allocation6 + $0x1], 1 }
 0x1c3   :  { %638 = vsyncpa [#allocation9], 1 }
 0x1c4   :  { %639 = vsyncpa [#allocation4], 1 }
 0x1c5   :  { %641 = vsyncpa [#allocation4 + $0x1], 1 }

</bundles_post_ra>
